<compile_context>
chip_gen: v7x
topology: tpu7x:2x2x1
jax: 0.10.0
libtpu: 0.0.40
codegen_flags: <defaults>
</compile_context>

<pallas_src>
import functools

import numpy as np
import jax
import jax.numpy as jnp
from jax.experimental import pallas as pl
from jax.experimental.pallas import tpu as pltpu


def _round_up(v, m):
    return (v + m - 1) // m * m


def _choose_tile(dim, max_tile, align=128):
    """Tile size: a multiple of `align`, <= max_tile, preferring exact divisors of the
    align-padded dimension (the caller pads the array up to a multiple of the result)."""
    dim_al = _round_up(dim, align)
    if dim_al <= max_tile:
        return dim_al
    for t in range(max_tile, align - 1, -align):
        if dim_al % t == 0:
            return t
    return max_tile


def repack_qweight(qweight_u32, bits, block_k):
    """Host-side (numpy) load-time preprocessing.  Re-arranges GPTQ-packed qweight so that,
    within every TK-row kernel tile, bit-field j of packed word-row r holds natural weight row
    j*(TK//pack) + r.  The kernel can then unpack field-by-field into sublane-contiguous slabs
    that land directly in natural K order (no cross-sublane interleave).  Output stays packed
    int32 (same size as the input), so no large unpacked tensor ever reaches HBM."""
    pack = 32 // bits
    maxq = (1 << bits) - 1
    kp, n = qweight_u32.shape
    k = kp * pack
    assert k % block_k == 0 and block_k % pack == 0
    tkp = block_k // pack
    shifts = (np.arange(pack, dtype=np.uint32) * bits)[None, :, None]
    w = (qweight_u32[:, None, :] >> shifts) & np.uint32(maxq)      # [Kp, pack, N]
    w = w.reshape(k, n)                                            # natural row = p*pack + j
    w = w.reshape(k // block_k, pack, tkp, n)                      # [tile, j, r, N]
    out = np.zeros((k // block_k, tkp, n), np.uint32)
    for j in range(pack):
        out |= w[:, j] << np.uint32(j * bits)
    return jnp.asarray(out.reshape(kp, n).view(np.int32))


def _quant_linear_kernel(x_ref, qw_ref, xsum_ref, scale_ref, szero_ref, bias_ref,
                         o_ref, acc_ref, w_ref, *, bits, pack, tkp):
    k_id = pl.program_id(2)

    @pl.when(k_id == 0)
    def _():
        acc_ref[...] = jnp.zeros_like(acc_ref)

    maxq = (1 << bits) - 1
    qw = qw_ref[...]                                    # [TKp, TN] int32 (tile-local, j-major fields)
    # Unpack: thanks to the load-time repack, field j of word-row r is natural row j*TKp + r of
    # this K tile.  One shift + and + ONE int32->bf16 cast per field (values <= maxq <= 255 are
    # exact in bf16); each slab is written straight into its natural-K slot of the bf16 scratch,
    # so there is no concatenate copy and no extra f32 round-trip.
    for j in range(pack):
        w_ref[pl.ds(j * tkp, tkp), :] = ((qw >> (j * bits)) & maxq).astype(jnp.bfloat16)

    acc_ref[...] += jnp.dot(x_ref[...], w_ref[...], preferred_element_type=jnp.float32)

    @pl.when(k_id == pl.num_programs(2) - 1)
    def _():
        # Output-side dequant (single group: group_size == infeatures), hoisted out of the K loop:
        #   out = scale * (x @ W_int) - rowsum(x) * (scale * zero) + bias
        o_ref[...] = (scale_ref[...] * acc_ref[...]
                      - xsum_ref[...] * szero_ref[...]
                      + bias_ref[...]).astype(o_ref.dtype)


def quant_linear_forward(x, qweight, qzeros, scales, g_idx, bias, *, bits,
                         block_m=None, block_n=None, block_k=None):
    """Mirrors QuantLinear.forward (bits in {2,4,8}, group_size == infeatures)."""
    if bits not in (2, 4, 8):
        raise NotImplementedError("Only 2,4,8 bits are supported here.")   # torch also rejects 3-bit
    pack = 32 // bits
    maxq = (1 << bits) - 1

    K = x.shape[-1]
    G, N = scales.shape
    if G != 1 or qweight.shape[0] * pack != K:
        # the torch module fixes group_size = infeatures, i.e. a single quantization group
        raise NotImplementedError("group_size must equal infeatures (single group)")
    if np.any(np.asarray(g_idx) != 0):
        # TODO(synk): gather fallback for shuffled (act-order) g_idx.
        raise NotImplementedError("only the trivial all-zero g_idx is supported")
    out_shape = x.shape[:-1] + (N,)

    # ---- tile selection ---------------------------------------------------------------------
    # lane_k keeps the in-kernel bf16 slab writes aligned to the (16,128) bf16 native tile.
    lane_k = max(128, 16 * pack)
    TK = block_k if block_k is not None else _choose_tile(K, 1024, lane_k)
    TN = block_n if block_n is not None else _choose_tile(N, 1024)
    assert TK % lane_k == 0 and TN % 128 == 0, "block_k/block_n must be lane-aligned"
    TKp = TK // pack
    K_pad = _round_up(K, TK)
    N_pad = _round_up(N, TN)

    x2d = x.reshape(-1, K).astype(jnp.bfloat16)          # MXU-native activation dtype
    M = x2d.shape[0]
    if block_m is not None:
        TM = block_m
    elif M >= 512:
        TM = 512
    else:
        TM = max(8, _round_up(M, 8))                      # decode-sized M: don't burn MXU on padding
    assert TM % 8 == 0
    M_pad = _round_up(M, TM)
    if M_pad != M or K_pad != K:
        x2d = jnp.pad(x2d, ((0, M_pad - M), (0, K_pad - K)))
    # Precomputed row sums for the output-side zero-point term (padded rows/cols are zero).
    xsum = jnp.sum(x2d, axis=1, keepdims=True, dtype=jnp.float32)          # [M_pad, 1]

    # ---- host-side (numpy) parameter prep: weights stay in packed int32 form -----------------
    qw_u32 = np.ascontiguousarray(np.asarray(qweight)).view(np.uint32)     # [K//pack, N]
    qw_u32 = np.pad(qw_u32, ((0, K_pad // pack - qw_u32.shape[0]), (0, N_pad - N)))
    qweight_t = repack_qweight(qw_u32, bits, TK)                           # [K_pad//pack, N_pad]

    qz_u32 = np.ascontiguousarray(np.asarray(qzeros)).view(np.uint32)      # [1, N//pack]
    zshift = (np.arange(pack, dtype=np.uint32) * bits)[None, None, :]
    zeros = ((qz_u32[:, :, None] >> zshift) & np.uint32(maxq)).reshape(1, N)
    zeros = zeros.astype(np.float32) + 1.0                                 # +1 like torch
    scales_np = np.asarray(scales, np.float32).reshape(1, N)
    szero_np = np.pad(scales_np * zeros, ((0, 0), (0, N_pad - N)))
    scales_np = np.pad(scales_np, ((0, 0), (0, N_pad - N)))
    bias_np = (np.zeros((1, N), np.float32) if bias is None
               else np.asarray(bias, np.float32).reshape(1, N))
    bias_np = np.pad(bias_np, ((0, 0), (0, N_pad - N)))

    grid = (M_pad // TM, N_pad // TN, K_pad // TK)
    kernel = functools.partial(_quant_linear_kernel, bits=bits, pack=pack, tkp=TKp)
    out2d = pl.pallas_call(
        kernel,
        out_shape=jax.ShapeDtypeStruct((M_pad, N_pad), jnp.bfloat16),
        grid=grid,
        in_specs=[
            pl.BlockSpec((TM, TK), lambda m, n, k: (m, k)),       # x tile (bf16)
            pl.BlockSpec((TKp, TN), lambda m, n, k: (k, n)),      # packed qweight tile (int32)
            pl.BlockSpec((TM, 1), lambda m, n, k: (m, 0)),        # precomputed rowsum(x)
            pl.BlockSpec((1, TN), lambda m, n, k: (0, n)),        # scales (single group)
            pl.BlockSpec((1, TN), lambda m, n, k: (0, n)),        # scales * zeros
            pl.BlockSpec((1, TN), lambda m, n, k: (0, n)),        # bias
        ],
        out_specs=pl.BlockSpec((TM, TN), lambda m, n, k: (m, n)),
        scratch_shapes=[
            pltpu.VMEM((TM, TN), jnp.float32),                    # f32 accumulator
            pltpu.VMEM((TK, TN), jnp.bfloat16),                   # unpacked integer-weight slab
        ],
        compiler_params=pltpu.CompilerParams(
            dimension_semantics=("parallel", "parallel", "arbitrary"),
            vmem_limit_bytes=48 * 1024 * 1024),
    )(x2d, qweight_t, xsum, jnp.asarray(scales_np), jnp.asarray(szero_np), jnp.asarray(bias_np))

    out2d = out2d[:M, :N]
    # torch result dtype is float16 (x.half() @ fp16 weights, + fp16 bias)
    return out2d.astype(jnp.float16).reshape(out_shape)


# ------------------------------- test helpers (GPTQ packing) -------------------------------
def _pack_rows(values, bits):
    """Pack integer rows GPTQ-style: natural row p*pack+j -> bits [j*bits,(j+1)*bits) of word p."""
    pack = 32 // bits
    k, n = values.shape
    v = values.reshape(k // pack, pack, n).astype(np.uint32)
    out = np.zeros((k // pack, n), np.uint32)
    for j in range(pack):
        out |= v[:, j, :] << np.uint32(j * bits)
    return jnp.asarray(out.view(np.int32))


def _pack_cols(values, bits):
    """Pack integer columns GPTQ-style (qzeros layout)."""
    pack = 32 // bits
    g, n = values.shape
    v = values.reshape(g, n // pack, pack).astype(np.uint32)
    out = np.zeros((g, n // pack), np.uint32)
    for j in range(pack):
        out |= v[:, :, j] << np.uint32(j * bits)
    return jnp.asarray(out.view(np.int32))


def _run_case(key, bits, batch, seq, infeatures, outfeatures, **tile_kwargs):
    pack = 32 // bits
    maxq = (1 << bits) - 1
    k1, k2, k3, k4, k5 = jax.random.split(key, 5)
    x = jax.random.normal(k1, (batch, seq, infeatures), jnp.float32).astype(jnp.float16)
    w_int = np.asarray(jax.random.randint(k2, (infeatures, outfeatures), 0, maxq + 1), np.uint32)
    z_stored = np.asarray(jax.random.randint(k3, (1, outfeatures), 0, maxq + 1), np.uint32)
    scales = jax.random.uniform(k4, (1, outfeatures), jnp.float32, 0.01, 0.1).astype(jnp.float16)
    bias = jax.random.normal(k5, (outfeatures,), jnp.float32).astype(jnp.float16)
    g_idx = jnp.zeros((infeatures,), jnp.int32)           # group_size == infeatures -> one group

    qweight = _pack_rows(w_int, bits)
    qzeros = _pack_cols(z_stored, bits)

    out = quant_linear_forward(x, qweight, qzeros, scales, g_idx, bias, bits=bits, **tile_kwargs)
    out = jax.block_until_ready(out)
    assert out.shape == (batch, seq, outfeatures) and out.dtype == jnp.float16

    # reference of the torch semantics (activations matched to the kernel's bf16 choice)
    zeros_full = z_stored.astype(np.float32) + 1.0                          # [1, N]
    w_ref = np.asarray(scales, np.float32) * (w_int.astype(np.float32) - zeros_full)
    x_ref = np.asarray(x.astype(jnp.bfloat16).astype(jnp.float32)).reshape(-1, infeatures)
    out_ref = (x_ref @ w_ref + np.asarray(bias, np.float32)).reshape(batch, seq, outfeatures)
    np.testing.assert_allclose(np.asarray(out, np.float32), out_ref, rtol=2e-2, atol=2e-2)


if __name__ == "__main__":
    key = jax.random.PRNGKey(0)
    k_a, k_b = jax.random.split(key)

    # case 1: 4-bit, explicit small tiles so the (M, N, K) grid has multiple N and K steps
    # (exercises the resident accumulator and the k==last dequant epilogue).
    _run_case(k_a, bits=4, batch=2, seq=8, infeatures=256, outfeatures=256,
              block_n=128, block_k=128)
    # case 2: 8-bit, odd K / N and tiny M — exercises the wrapper-side K/N/M padding with the
    # default (auto-chosen) tiles.
    _run_case(k_b, bits=8, batch=1, seq=5, infeatures=320, outfeatures=192)

    print("KERNEL_OK")
</pallas_src>

<mosaic_0001>
module attributes {stable_mosaic.version = 11 : i64} {
  func.func @_quant_linear_kernel(%arg0: i32, %arg1: i32, %arg2: i32, %arg3: memref<16x128xbf16, #tpu.memory_space<vmem>>, %arg4: memref<16x128xi32, #tpu.memory_space<vmem>>, %arg5: memref<16x1xf32, #tpu.memory_space<vmem>>, %arg6: memref<1x128xf32, #tpu.memory_space<vmem>>, %arg7: memref<1x128xf32, #tpu.memory_space<vmem>>, %arg8: memref<1x128xf32, #tpu.memory_space<vmem>>, %arg9: memref<16x128xbf16, #tpu.memory_space<vmem>>, %arg10: memref<16x128xf32, #tpu.memory_space<vmem>>, %arg11: memref<128x128xbf16, #tpu.memory_space<vmem>>) attributes {dimension_semantics = [#tpu.dimension_semantics<parallel>, #tpu.dimension_semantics<parallel>, #tpu.dimension_semantics<arbitrary>], iteration_bounds = array<i64: 1, 2, 2>, scalar_prefetch = 0 : i64, scratch_operands = 2 : i64, tpu.core_type = #tpu.core_type<tc>, window_params = [{transform_indices = @transform_0, window_bounds = array<i64: 16, 128>}, {transform_indices = @transform_1, window_bounds = array<i64: 16, 128>}, {transform_indices = @transform_2, window_bounds = array<i64: 16, 1>}, {transform_indices = @transform_3, window_bounds = array<i64: 1, 128>}, {transform_indices = @transform_4, window_bounds = array<i64: 1, 128>}, {transform_indices = @transform_5, window_bounds = array<i64: 1, 128>}, {transform_indices = @transform_6, window_bounds = array<i64: 16, 128>}]} {
    %c0_i32 = arith.constant 0 : i32
    %0 = arith.cmpi eq, %arg2, %c0_i32 : i32
    %1 = arith.extui %0 : i1 to i32
    %c0_i32_0 = arith.constant 0 : i32
    %2 = arith.cmpi ne, %1, %c0_i32_0 : i32
    scf.if %2 {
      %cst_28 = arith.constant 0.000000e+00 : f32
      %61 = vector.broadcast %cst_28 : f32 to vector<16x128xf32>
      %c0_29 = arith.constant 0 : index
      %c0_30 = arith.constant 0 : index
      %62 = vector.load %arg10[%c0_29, %c0_30] : memref<16x128xf32, #tpu.memory_space<vmem>>, vector<16x128xf32>
      tpu.vector_store %arg10[%c0_29, %c0_30], %61 {strides = array<i32>} : memref<16x128xf32, #tpu.memory_space<vmem>>, vector<16x128xf32>,
    } else {
    }
    %c0 = arith.constant 0 : index
    %c0_1 = arith.constant 0 : index
    %3 = vector.load %arg4[%c0, %c0_1] : memref<16x128xi32, #tpu.memory_space<vmem>>, vector<16x128xi32>
    %c0_i32_2 = arith.constant 0 : i32
    %4 = vector.broadcast %c0_i32_2 : i32 to vector<16x128xi32>
    %5 = arith.shrsi %3, %4 : vector<16x128xi32>
    %c15_i32 = arith.constant 15 : i32
    %6 = vector.broadcast %c15_i32 : i32 to vector<16x128xi32>
    %7 = arith.andi %5, %6 : vector<16x128xi32>
    %8 = arith.sitofp %7 : vector<16x128xi32> to vector<16x128xbf16>
    %c0_3 = arith.constant 0 : index
    %c0_4 = arith.constant 0 : index
    %9 = vector.load %arg11[%c0_3, %c0_4] : memref<128x128xbf16, #tpu.memory_space<vmem>>, vector<16x128xbf16>
    tpu.vector_store %arg11[%c0_3, %c0_4], %8 {strides = array<i32>} : memref<128x128xbf16, #tpu.memory_space<vmem>>, vector<16x128xbf16>,
    %c4_i32 = arith.constant 4 : i32
    %10 = vector.broadcast %c4_i32 : i32 to vector<16x128xi32>
    %11 = arith.shrsi %3, %10 : vector<16x128xi32>
    %c15_i32_5 = arith.constant 15 : i32
    %12 = vector.broadcast %c15_i32_5 : i32 to vector<16x128xi32>
    %13 = arith.andi %11, %12 : vector<16x128xi32>
    %14 = arith.sitofp %13 : vector<16x128xi32> to vector<16x128xbf16>
    %c16 = arith.constant 16 : index
    %c0_6 = arith.constant 0 : index
    %15 = vector.load %arg11[%c16, %c0_6] : memref<128x128xbf16, #tpu.memory_space<vmem>>, vector<16x128xbf16>
    tpu.vector_store %arg11[%c16, %c0_6], %14 {strides = array<i32>} : memref<128x128xbf16, #tpu.memory_space<vmem>>, vector<16x128xbf16>,
    %c8_i32 = arith.constant 8 : i32
    %16 = vector.broadcast %c8_i32 : i32 to vector<16x128xi32>
    %17 = arith.shrsi %3, %16 : vector<16x128xi32>
    %c15_i32_7 = arith.constant 15 : i32
    %18 = vector.broadcast %c15_i32_7 : i32 to vector<16x128xi32>
    %19 = arith.andi %17, %18 : vector<16x128xi32>
    %20 = arith.sitofp %19 : vector<16x128xi32> to vector<16x128xbf16>
    %c32 = arith.constant 32 : index
    %c0_8 = arith.constant 0 : index
    %21 = vector.load %arg11[%c32, %c0_8] : memref<128x128xbf16, #tpu.memory_space<vmem>>, vector<16x128xbf16>
    tpu.vector_store %arg11[%c32, %c0_8], %20 {strides = array<i32>} : memref<128x128xbf16, #tpu.memory_space<vmem>>, vector<16x128xbf16>,
    %c12_i32 = arith.constant 12 : i32
    %22 = vector.broadcast %c12_i32 : i32 to vector<16x128xi32>
    %23 = arith.shrsi %3, %22 : vector<16x128xi32>
    %c15_i32_9 = arith.constant 15 : i32
    %24 = vector.broadcast %c15_i32_9 : i32 to vector<16x128xi32>
    %25 = arith.andi %23, %24 : vector<16x128xi32>
    %26 = arith.sitofp %25 : vector<16x128xi32> to vector<16x128xbf16>
    %c48 = arith.constant 48 : index
    %c0_10 = arith.constant 0 : index
    %27 = vector.load %arg11[%c48, %c0_10] : memref<128x128xbf16, #tpu.memory_space<vmem>>, vector<16x128xbf16>
    tpu.vector_store %arg11[%c48, %c0_10], %26 {strides = array<i32>} : memref<128x128xbf16, #tpu.memory_space<vmem>>, vector<16x128xbf16>,
    %c16_i32 = arith.constant 16 : i32
    %28 = vector.broadcast %c16_i32 : i32 to vector<16x128xi32>
    %29 = arith.shrsi %3, %28 : vector<16x128xi32>
    %c15_i32_11 = arith.constant 15 : i32
    %30 = vector.broadcast %c15_i32_11 : i32 to vector<16x128xi32>
    %31 = arith.andi %29, %30 : vector<16x128xi32>
    %32 = arith.sitofp %31 : vector<16x128xi32> to vector<16x128xbf16>
    %c64 = arith.constant 64 : index
    %c0_12 = arith.constant 0 : index
    %33 = vector.load %arg11[%c64, %c0_12] : memref<128x128xbf16, #tpu.memory_space<vmem>>, vector<16x128xbf16>
    tpu.vector_store %arg11[%c64, %c0_12], %32 {strides = array<i32>} : memref<128x128xbf16, #tpu.memory_space<vmem>>, vector<16x128xbf16>,
    %c20_i32 = arith.constant 20 : i32
    %34 = vector.broadcast %c20_i32 : i32 to vector<16x128xi32>
    %35 = arith.shrsi %3, %34 : vector<16x128xi32>
    %c15_i32_13 = arith.constant 15 : i32
    %36 = vector.broadcast %c15_i32_13 : i32 to vector<16x128xi32>
    %37 = arith.andi %35, %36 : vector<16x128xi32>
    %38 = arith.sitofp %37 : vector<16x128xi32> to vector<16x128xbf16>
    %c80 = arith.constant 80 : index
    %c0_14 = arith.constant 0 : index
    %39 = vector.load %arg11[%c80, %c0_14] : memref<128x128xbf16, #tpu.memory_space<vmem>>, vector<16x128xbf16>
    tpu.vector_store %arg11[%c80, %c0_14], %38 {strides = array<i32>} : memref<128x128xbf16, #tpu.memory_space<vmem>>, vector<16x128xbf16>,
    %c24_i32 = arith.constant 24 : i32
    %40 = vector.broadcast %c24_i32 : i32 to vector<16x128xi32>
    %41 = arith.shrsi %3, %40 : vector<16x128xi32>
    %c15_i32_15 = arith.constant 15 : i32
    %42 = vector.broadcast %c15_i32_15 : i32 to vector<16x128xi32>
    %43 = arith.andi %41, %42 : vector<16x128xi32>
    %44 = arith.sitofp %43 : vector<16x128xi32> to vector<16x128xbf16>
    %c96 = arith.constant 96 : index
    %c0_16 = arith.constant 0 : index
    %45 = vector.load %arg11[%c96, %c0_16] : memref<128x128xbf16, #tpu.memory_space<vmem>>, vector<16x128xbf16>
    tpu.vector_store %arg11[%c96, %c0_16], %44 {strides = array<i32>} : memref<128x128xbf16, #tpu.memory_space<vmem>>, vector<16x128xbf16>,
    %c28_i32 = arith.constant 28 : i32
    %46 = vector.broadcast %c28_i32 : i32 to vector<16x128xi32>
    %47 = arith.shrsi %3, %46 : vector<16x128xi32>
    %c15_i32_17 = arith.constant 15 : i32
    %48 = vector.broadcast %c15_i32_17 : i32 to vector<16x128xi32>
    %49 = arith.andi %47, %48 : vector<16x128xi32>
    %50 = arith.sitofp %49 : vector<16x128xi32> to vector<16x128xbf16>
    %c112 = arith.constant 112 : index
    %c0_18 = arith.constant 0 : index
    %51 = vector.load %arg11[%c112, %c0_18] : memref<128x128xbf16, #tpu.memory_space<vmem>>, vector<16x128xbf16>
    tpu.vector_store %arg11[%c112, %c0_18], %50 {strides = array<i32>} : memref<128x128xbf16, #tpu.memory_space<vmem>>, vector<16x128xbf16>,
    %c0_19 = arith.constant 0 : index
    %c0_20 = arith.constant 0 : index
    %52 = vector.load %arg10[%c0_19, %c0_20] : memref<16x128xf32, #tpu.memory_space<vmem>>, vector<16x128xf32>
    %c0_21 = arith.constant 0 : index
    %c0_22 = arith.constant 0 : index
    %53 = vector.load %arg3[%c0_21, %c0_22] : memref<16x128xbf16, #tpu.memory_space<vmem>>, vector<16x128xbf16>
    %c0_23 = arith.constant 0 : index
    %c0_24 = arith.constant 0 : index
    %54 = vector.load %arg11[%c0_23, %c0_24] : memref<128x128xbf16, #tpu.memory_space<vmem>>, vector<128x128xbf16>
    %cst = arith.constant dense<0.000000e+00> : vector<16x128xf32>
    %55 = tpu.matmul %53, %54, %cst {dimension_numbers = #tpu.dot_dimension_numbers<[1], [0], [0], [1], [0, 0, 1, 1], [], []>} : vector<16x128xbf16>, vector<128x128xbf16>, vector<16x128xf32> -> vector<16x128xf32>
    %56 = arith.addf %52, %55 : vector<16x128xf32>
    %c0_25 = arith.constant 0 : index
    %c0_26 = arith.constant 0 : index
    %57 = vector.load %arg10[%c0_25, %c0_26] : memref<16x128xf32, #tpu.memory_space<vmem>>, vector<16x128xf32>
    tpu.vector_store %arg10[%c0_25, %c0_26], %56 {strides = array<i32>} : memref<16x128xf32, #tpu.memory_space<vmem>>, vector<16x128xf32>,
    %c1_i32 = arith.constant 1 : i32
    %58 = arith.cmpi eq, %arg2, %c1_i32 : i32
    %59 = arith.extui %58 : i1 to i32
    %c0_i32_27 = arith.constant 0 : i32
    %60 = arith.cmpi ne, %59, %c0_i32_27 : i32
    scf.if %60 {
      %c0_28 = arith.constant 0 : index
      %c0_29 = arith.constant 0 : index
      %61 = vector.load %arg6[%c0_28, %c0_29] : memref<1x128xf32, #tpu.memory_space<vmem>>, vector<1x128xf32>
      %c0_30 = arith.constant 0 : index
      %c0_31 = arith.constant 0 : index
      %62 = vector.load %arg10[%c0_30, %c0_31] : memref<16x128xf32, #tpu.memory_space<vmem>>, vector<16x128xf32>
      %63 = vector.broadcast %61 : vector<1x128xf32> to vector<16x128xf32>
      %64 = arith.mulf %63, %62 : vector<16x128xf32>
      %c0_32 = arith.constant 0 : index
      %c0_33 = arith.constant 0 : index
      %65 = vector.load %arg5[%c0_32, %c0_33] : memref<16x1xf32, #tpu.memory_space<vmem>>, vector<16x1xf32>
      %c0_34 = arith.constant 0 : index
      %c0_35 = arith.constant 0 : index
      %66 = vector.load %arg7[%c0_34, %c0_35] : memref<1x128xf32, #tpu.memory_space<vmem>>, vector<1x128xf32>
      %67 = vector.broadcast %65 : vector<16x1xf32> to vector<16x128xf32>
      %68 = vector.broadcast %66 : vector<1x128xf32> to vector<16x128xf32>
      %69 = arith.mulf %67, %68 : vector<16x128xf32>
      %70 = arith.subf %64, %69 : vector<16x128xf32>
      %c0_36 = arith.constant 0 : index
      %c0_37 = arith.constant 0 : index
      %71 = vector.load %arg8[%c0_36, %c0_37] : memref<1x128xf32, #tpu.memory_space<vmem>>, vector<1x128xf32>
      %72 = vector.broadcast %71 : vector<1x128xf32> to vector<16x128xf32>
      %73 = arith.addf %70, %72 : vector<16x128xf32>
      %74 = arith.truncf %73 : vector<16x128xf32> to vector<16x128xbf16>
      %c0_38 = arith.constant 0 : index
      %c0_39 = arith.constant 0 : index
      %75 = vector.load %arg9[%c0_38, %c0_39] : memref<16x128xbf16, #tpu.memory_space<vmem>>, vector<16x128xbf16>
      tpu.vector_store %arg9[%c0_38, %c0_39], %74 {strides = array<i32>} : memref<16x128xbf16, #tpu.memory_space<vmem>>, vector<16x128xbf16>,
    } else {
    }
    return
  }
  func.func @transform_0(%arg0: i32, %arg1: i32, %arg2: i32) -> (i32, i32) {
    %c0_i32 = arith.constant 0 : i32
    return %arg0, %arg2 : i32, i32
  }
  func.func @transform_1(%arg0: i32, %arg1: i32, %arg2: i32) -> (i32, i32) {
    %c0_i32 = arith.constant 0 : i32
    return %arg2, %arg1 : i32, i32
  }
  func.func @transform_2(%arg0: i32, %arg1: i32, %arg2: i32) -> (i32, i32) {
    %c0_i32 = arith.constant 0 : i32
    %c0_i32_0 = arith.constant 0 : i32
    return %arg0, %c0_i32 : i32, i32
  }
  func.func @transform_3(%arg0: i32, %arg1: i32, %arg2: i32) -> (i32, i32) {
    %c0_i32 = arith.constant 0 : i32
    %c0_i32_0 = arith.constant 0 : i32
    return %c0_i32, %arg1 : i32, i32
  }
  func.func @transform_4(%arg0: i32, %arg1: i32, %arg2: i32) -> (i32, i32) {
    %c0_i32 = arith.constant 0 : i32
    %c0_i32_0 = arith.constant 0 : i32
    return %c0_i32, %arg1 : i32, i32
  }
  func.func @transform_5(%arg0: i32, %arg1: i32, %arg2: i32) -> (i32, i32) {
    %c0_i32 = arith.constant 0 : i32
    %c0_i32_0 = arith.constant 0 : i32
    return %c0_i32, %arg1 : i32, i32
  }
  func.func @transform_6(%arg0: i32, %arg1: i32, %arg2: i32) -> (i32, i32) {
    %c0_i32 = arith.constant 0 : i32
    return %arg0, %arg1 : i32, i32
  }
}

</mosaic_0001>

<bundles_post_ra>
// kernel: tpu_custom_call.1
= control target key start
LH: loop header
LB: loop body
LE: loop exit
PB: predicated region body
PF: predicated region fallthrough
CT: control target
= control target key end

     0   :  { %s1541_s0 = inlined_call_operand.vmem [shape: bf16[16,256], index: 0, kind: input, shape index: {}]   ;;  %s1542_s1 = inlined_call_operand.hbm [shape: s32[32,256], index: 1, kind: input, shape index: {}]   ;;  %s1543_s2 = inlined_call_operand.vmem [shape: f32[16,1], index: 2, kind: input, shape index: {}]   ;;  %s1544_s3 = inlined_call_operand.vmem [shape: f32[1,256], index: 3, kind: input, shape index: {}]   ;;  %s1545_s4 = inlined_call_operand.vmem [shape: f32[1,256], index: 4, kind: input, shape index: {}]   ;;  %s1546_s5 = inlined_call_operand.vmem [shape: f32[1,256], index: 5, kind: input, shape index: {}]   ;;  %s1547_s6 = inlined_call_operand.hbm [shape: bf16[16,256], index: 6, kind: output, shape index: {}]  }
   0x1   :  { %1557 = sst [smem:[#allocation20_spill]] %s1543_s2 }
   0x2   :  { %1558 = sst [smem:[#allocation21_spill]] %s1547_s6 }
   0x3   :  { %11 = vsyncpa [#allocation6], 0 }
   0x4   :  { %13 = vsyncpa [#allocation6 + $0x1], 0 }
   0x5   :  { %14 = vsyncpa [#allocation7], 0 }
   0x6   :  { %16 = vsyncpa [#allocation7 + $0x1], 0  ;;  %s1198_s21 = smov 0   ;;  %s1200_s22 = smov 0  }
   0x7   :  { %s1202_s23 = smov 0   ;;  %s1204_s24 = smov 0  }
   0x8   :  { %s1206_s25 = smov 0   ;;  %s1208_s26 = smov 0  }
   0x9   :  { %s1210_s27 = smov 0   ;;  %s1212_s28 = smov 0  }
   0xa   :  { %s1214_s29 = smov 0   ;;  %s1216_s30 = smov 0  }
   0xb   :  { %s1218_s7 = smov 0   ;;  %s1220_s8 = smov 0  }
   0xc   :  { %s1222_s9 = smov 0  }
   0xd LB: > { %1559 = sst [smem:[#allocation11_spill]] %s1101_s21  ;;  %s792_s10 = sadd.s32 4294967295, %s1149_s9   ;;  %s1149_s9 = sphi %s1222_s9, %s22_s9   ;;  %s1145_s8 = sphi %s1220_s8, %s1596_s8   ;;  %s1141_s7 = sphi %s1218_s7, %s1595_s7   ;;  %s1137_s30 = sphi %s1216_s30, %s1594_s30   ;;  %s1133_s29 = sphi %s1214_s29, %s1593_s29   ;;  %s1129_s28 = sphi %s1212_s28, %s1585_s28   ;;  %s1125_s27 = sphi %s1210_s27, %s1584_s27   ;;  %s1121_s26 = sphi %s1208_s26, %s1592_s26   ;;  %s1117_s25 = sphi %s1206_s25, %s1591_s25   ;;  %s1113_s24 = sphi %s1204_s24, %s1590_s24   ;;  %s1109_s23 = sphi %s1202_s23, %s1582_s23   ;;  %s1105_s22 = sphi %s1200_s22, %s1589_s22   ;;  %s1101_s21 = sphi %s1198_s21, %s1588_s21  }
   0xe   : > { %1560 = sst [smem:[#allocation12_spill]] %s1109_s23  ;;  %s34_s12 = sadd.s32 1, %s1141_s7 }
   0xf   : > { %1561 = sst [smem:[#allocation13_spill]] %s1129_s28  ;;  %s37_s13 = sadd.s32 1, %s1145_s8 }
  0x10   : > { %p35_p0 = scmp.ge.s32.totalorder %s34_s12, 2  ;;  %s50_s14 = sadd.s32 1, %s1129_s28 }
  0x11   : > { %p57_p1 = scmp.ne.s32.totalorder %s1129_s28, %s1125_s27  ;;  %p58_p2 = scmp.eq.s32.totalorder %s1149_s9, 0 }
  0x12   : > { %s1598_s12 = smov (%p35_p0, %s34_s12), 0  ;;  %s1600_s13 = smov (!%p35_p0, %s37_s13), %s1145_s8 }
  0x13   : > { %1562 = sst [smem:[#allocation14_spill]] %s1598_s12  ;;  %s46_s15 = ssub.s32 %s1141_s7, %s1598_s12 }
  0x14   : > { %p1276_p3 = por %p58_p2, %p57_p1  ;;  %p39_p4 = scmp.ge.s32.totalorder %s1600_s13, 2 }
  0x15   : > { %p48_p5 = scmp.eq.s32.totalorder %s46_s15, 0  ;;  %s78_s17 = sadd.s32 1, %s1121_s26 }
  0x16   : > { %p85_p6 = scmp.ne.s32.totalorder %s1121_s26, %s1117_s25  ;;  %s1602_s13 = smov (%p39_p4, %s1600_s13), 0 }
  0x17   : > { %1564 = sst [smem:[#allocation15_spill]] %s1602_s13  ;;  %s74_s19 = ssub.s32 %s1145_s8, %s1602_s13 }
  0x18   : > { %s1286_s18 = scalar_select %p48_p5, %s1129_s28, %s50_s14  }
  0x19   : > { %p1290_p7 = por %p85_p6, %p58_p2  ;;  %s75_s11 = sor.u32 %s74_s19, %s46_s15 }
  0x1a   : > { %1565 = sst [smem:[#allocation16_spill]] %s1286_s18  ;;  %p91_p8 = scmp.ne.s32.totalorder %s1117_s25, %s1113_s24 }
  0x1b   : > { %p76_p9 = scmp.eq.s32.totalorder %s75_s11, 0  ;;  %p92_p10 = scmp.eq.s32.totalorder %s792_s10, 0 }
  0x1c   : > { %p208_p11 = scmp.eq.s32.totalorder %s74_s19, 0  ;;  %s210_s12 = sadd.s32 1, %s1109_s23 }
  0x1d   : > { %s1300_s6 = scalar_select %p76_p9, %s1121_s26, %s78_s17  }
  0x1e   : > { %p1302_p12 = por %p92_p10, %p91_p8  ;;  %p220_p13 = scmp.ne.s32.totalorder %s1109_s23, %s1105_s22 }
  0x1f   : > { %1567 = sst [smem:[#allocation17_spill]] %s1300_s6  ;;  %p221_p0 = scmp.eq.s32.totalorder %s792_s10, 3 }
  0x20   : > { %s1309_s14 = scalar_select %p208_p11, %s1109_s23, %s210_s12  }
  0x21   : > { %p226_p1 = scmp.ne.s32.totalorder %s1105_s22, %s1101_s21  ;;  %s1570_s13 = sadd.s32 4294967294, %s1149_s9  }
  0x22   : > { %1569 = sst [smem:[#allocation18_spill]] %s1309_s14  ;;  %p227_p2 = scmp.eq.s32.totalorder %s1570_s13, 3 }
  0x23   : > { %p1317_p4 = por %p221_p0, %p220_p13  ;;  %p796_p6 = scmp.ge.s32.totalorder %s1149_s9, 4 }
  0x24   : > { %p1321_p5 = por %p227_p2, %p226_p1 }
  0x25   : > { %s1571_s24 = scalar_select %p1317_p4, 1, 0 }
  0x26   : > { %s1572_s11 = scalar_select %p1321_p5, 1, 0 }
  0x27   : > { %252 = sbr.rel (%p796_p6) target bundleno = 81 (0x51), region = 20 }
  0x28   : > { %1573 = sst [smem:[#allocation19_spill]] %s1572_s11 }
  0x2e   : > { %255 = sbr.rel (!%p1276_p3) target bundleno = 53 (0x35), region = 24  ;;  %s257_s10 = sand.u32 (%p1276_p3), 1, %s1129_s28  }
  0x2f   : > { %s798_s12 = sshll.u32 (%p1276_p3), %s1141_s7, 2  ;;  %s797_s15 = sshll.u32 (%p1276_p3), %s257_s10, 3 }
  0x30   : > { %s264_s19 = scalar_lea.vmem (%p1276_p3), %s1541_s0, %s798_s12  ;;  %s259_s18 = scalar_lea.vmem (%p1276_p3), [#allocation4], %s797_s15 }
  0x31   : > { %v280_v0 = vld [vmem:[%s264_s19] sm:$0xf] (%p1276_p3)  ;;  %v282_v1 = vld [vmem:[%s264_s19 + $0x8] sm:$0xf] (%p1276_p3) }
  0x32   : > { %281 = vst [vmem:[%s259_s18] sm:$0xf] (%p1276_p3), %v280_v0  ;;  %283 = vst [vmem:[%s259_s18 + $0x4] sm:$0xf] (%p1276_p3), %v282_v1 }
  0x35 PF: > { %s311_s16 = sand.u32 1, %s1121_s26   ;;  %s821_s6 = sshll.u32 %s1141_s7, 2 }
  0x36   : > { %s799_s14 = sshll.u32 %s311_s16, 4  ;;  %s321_s28 = sadd.s32 %s1145_s8, %s821_s6 }
  0x37   : > { %s802_s23 = sshll.u32 %s321_s28, 7  ;;  %s315_s10 = scalar_lea.vmem [#allocation5], %s799_s14 }
  0x38   : > { %s324_s11 = sshll.u32 %s315_s10, 4  ;;  %s1339_s12 = scalar_lea.hbm %s1542_s1, %s802_s23  ;;  %s1341_s11 = int_to_ptr.vmem [resolvable:$true] %s324_s11 }
  0x39   : > { %s1343_s18 = scalar_lea.sflag [#allocation6], %s311_s16  ;;  %s983_s15 = scalar_lea.hbm %s1339_s12, 256 }
  0x3a   : > { %p984_p3 = scmp.ne.s32.totalorder %s1339_s12, %s983_s15  ;;  %s987_s14 = scalar_lea.hbm %s1542_s1, 1024 }
  0x3b   : > { %p988_p10 = scmp.lt.u32.totalorder %s1339_s12, %s1542_s1  ;;  %p989_p11 = scmp.lt.u32.totalorder %s987_s14, %s983_s15 }
  0x3c   : > { %p985_p8 = pnand %p984_p3, %p1290_p7  ;;  %p991_p0 = scmp.lt.u32.totalorder %s983_s15, %s1339_s12 }
  0x3d   : > { %p990_p13 = por %p989_p11, %p988_p10 }
  0x3e   : > { %p986_p9 = pneg %p985_p8 }
  0x3f   : > { %p992_p1 = por %p991_p0, %p990_p13 }
  0x41   : > { %p993_p2 = pnand %p992_p1, %p986_p9 }
  0x43   : > { %996 = shalt.err (!%p993_p2)
}
  0x44   : > { %s997_s17 = scalar_lea.vmem %s1341_s11, 256  ;;  %s1151_s19 = smov [#allocation5]  }
  0x45   : > { %p998_p6 = scmp.ne.s32.totalorder %s1341_s11, %s997_s17  ;;  %s1001_s16 = sshll.u32 %s1151_s19, 4  ;;  %s1002_s16 = int_to_ptr.vmem [resolvable:$false] %s1001_s16 }
  0x46   : > { %s1003_s10 = scalar_lea.vmem %s1002_s16, 512  ;;  %p1004_p5 = scmp.lt.s32.totalorder %s1341_s11, %s1002_s16 }
  0x47   : > { %p999_p3 = pnand %p998_p6, %p1290_p7  ;;  %p1005_p4 = scmp.lt.s32.totalorder %s1003_s10, %s997_s17 }
  0x49   : > { %p1000_p8 = pneg %p999_p3  ;;  %p1006_p10 = por %p1005_p4, %p1004_p5 }
  0x4b   : > { %p1007_p11 = pnand %p1006_p10, %p1000_p8 }
  0x4d   : > { %1010 = shalt.err (!%p1007_p11)
}
  0x4e   : > { %s1152_s13 = smov 256   ;;  %s1153_s15 = smov 128  }
  0x4f   : > { %s1154_s6 = smov 8  }
  0x50   : > { %858 = dma.hbm_to_vmem [thread:$0]  (%p1290_p7), %s1339_s12, 256, %s1341_s11, %s1343_s18, %s1152_s13, %s1153_s15, %s1154_s6  }
  0x51 PF: > { %p803_p9 = scmp.ge.s32.totalorder %s1149_s9, 1  ;;  %p350_p13 = scmp.lt.s32.totalorder %s1149_s9, 5 }
  0x53   : > { %p351_p0 = pnand %p803_p9, %p350_p13 }
  0x54   : > { %s357_s28 = sand.u32 (!%p351_p0), 1, %s1125_s27   ;;  %s363_s14 = sand.u32 (!%p351_p0), 1, %s1117_s25  }
  0x55   : > { %354 = sbr.rel (%p351_p0) target bundleno = 402 (0x192), region = 81  ;;  %s1371_s21 = sshll.u32 (!%p351_p0), %s357_s28, 3 }
  0x56   : > { %s805_s23 = sshll.u32 (!%p351_p0), %s363_s14, 4  ;;  %s359_s17 = scalar_lea.vmem (!%p351_p0), [#allocation4], %s1371_s21 }
  0x57   : > { %s364_s19 = scalar_lea.sflag (!%p351_p0), [#allocation6], %s363_s14  ;;  %s367_s20 = scalar_lea.vmem (!%p351_p0), [#allocation5], %s805_s23 }
  0x5c   : > { %1092 = dma.done.wait (%p1302_p12), %s364_s19, 256  }
  0x5d   : > { %1094 = vsyncadd (%p1302_p12), %s364_s19, 4294967040  ;;  %s411_s11 = sand.u32 1, %s1105_s22   ;;  %p422_p7 = scmp.lt.s32.totalorder %s1137_s30, 1 }
  0x5e   : > { %s1382_s27 = sshll.u32 %s411_s11, 3  ;;  %p807_p12 = scmp.ne.s32.totalorder %s1133_s29, 0 }
  0x5f   : > { %s1385_s12 = scalar_select %p422_p7, %s1137_s30, 1 }
  0x60   : > { %s413_s23 = scalar_lea.vmem [#allocation8], %s1382_s27  ;;  %436 = sbr.rel (%p807_p12) target bundleno = 103 (0x67), region = 93  ;;  %v1155_v2 = vmov (!%p807_p12), 0.0  }
  0x61   : > { %s424_s2 = scalar_lea.vmem %s1544_s3, %s1385_s12  ;;  %s427_s15 = scalar_lea.vmem %s1545_s4, %s1385_s12  ;;  %437 = vst [vmem:[#allocation2] sm:$0xff] (!%p807_p12), %v1155_v2  ;;  %438 = vst [vmem:[#allocation2 + $0x8] sm:$0xff] (!%p807_p12), %v1155_v2 }
  0x62   : > { %s430_s14 = scalar_lea.vmem %s1546_s5, %s1385_s12 }
  0x67 PF: > { %v1401_v3 = vld [vmem:[%s367_s20] sm:$0xff]  ;;  %v1403_v4 = vld [vmem:[%s367_s20 + $0x8] sm:$0xff]  ;;  %v1156_v5 = vmov 0.0   ;;  %vm1157_vm0 = vmmov 0   ;;  %p811_p4 = scmp.ne.s32.totalorder %s1133_s29, 1 }
  0x68   : > { %838 = vmatprep.subr.bf16.mxu0 %v1156_v5  ;;  %v441_v6 = vand.u32 15, %v1401_v3  ;;  %v442_v7 = vand.u32 15, %v1403_v4  ;;  %v447_v8 = vshra.s32 %v1401_v3, 4  ;;  %v448_v9 = vshra.s32 %v1403_v4, 4  ;;  %854 = vmatprep.mubr.msk.bf16.mxu0 %vm1157_vm0, %v1156_v5  ;;  %v981_v58 = vld [vmem:[%s359_s17] sm:$0xff]   ;;  %v503_v59 = vld [vmem:[#allocation2] sm:$0xff] }
  0x69   : > { %v455_v10 = vshra.s32 %v1401_v3, 8  ;;  %v456_v11 = vshra.s32 %v1403_v4, 8  ;;  %v463_v12 = vshra.s32 %v1401_v3, 12  ;;  %v464_v13 = vshra.s32 %v1403_v4, 12  ;;  %v504_v61 = vld [vmem:[#allocation2 + $0x8] sm:$0xff]  ;;  %s1574_s18 = sld [smem:[#allocation20_spill]] (!%p811_p4) }
  0x6a   : > { %v443_v14 = vcvt.s32.f32 %v441_v6  ;;  %v444_v15 = vcvt.s32.f32 %v442_v7  ;;  %v449_v16 = vand.u32 15, %v447_v8  ;;  %v450_v17 = vand.u32 15, %v448_v9  ;;  %v813_v6 = vld [vmem:[%s427_s15] ss:$0 sm:$0xff] (!%p811_p4) }
  0x6b   : > { %v457_v18 = vand.u32 15, %v455_v10  ;;  %v458_v19 = vand.u32 15, %v456_v11  ;;  %v465_v23 = vand.u32 15, %v463_v12  ;;  %v466_v24 = vand.u32 15, %v464_v13  ;;  %v812_v7 = vld [vmem:[%s424_s2] ss:$0 sm:$0xff] (!%p811_p4) }
  0x6c   : > { %v445_v20 = vpack.c.bf16 %v444_v15, %v443_v14  ;;  %v451_v21 = vcvt.s32.f32 %v449_v16  ;;  %v452_v22 = vcvt.s32.f32 %v450_v17  ;;  %v471_v25 = vshra.s32 %v1401_v3, 16  ;;  %v814_v17 = vld [vmem:[%s430_s14] ss:$0 sm:$0xff] (!%p811_p4) }
  0x6d   : > { %v459_v27 = vcvt.s32.f32 %v457_v18  ;;  %v460_v28 = vcvt.s32.f32 %v458_v19  ;;  %v472_v29 = vshra.s32 %v1403_v4, 16  ;;  %v467_v30 = vcvt.s32.f32 %v465_v23 }
  0x6e   : > { %839 = vmatpush3.bf16.msra.mxu0 %v445_v20  ;;  %v453_v26 = vpack.c.bf16 %v452_v22, %v451_v21  ;;  %v468_v31 = vcvt.s32.f32 %v466_v24  ;;  %v473_v32 = vand.u32 15, %v471_v25  ;;  %v479_v35 = vshra.s32 %v1401_v3, 20 }
  0x6f   : > { %840 = vmatprep.subr.bf16.mxu0 %v1156_v5  ;;  %v461_v33 = vpack.c.bf16 %v460_v28, %v459_v27  ;;  %v474_v34 = vand.u32 15, %v472_v29  ;;  %v480_v36 = vshra.s32 %v1403_v4, 20  ;;  %v487_v39 = vshra.s32 %v1401_v3, 24 }
  0x70   : > { %v469_v37 = vpack.c.bf16 %v468_v31, %v467_v30  ;;  %v475_v38 = vcvt.s32.f32 %v473_v32  ;;  %v481_v41 = vand.u32 15, %v479_v35  ;;  %v488_v43 = vshra.s32 %v1403_v4, 24 }
  0x71   : > { %v476_v40 = vcvt.s32.f32 %v474_v34  ;;  %v482_v42 = vand.u32 15, %v480_v36  ;;  %v489_v44 = vand.u32 15, %v487_v39  ;;  %v808_v49 = vshrl.u32 %v1401_v3, 28  ;;  %v581_v3 = vld [vmem:[%s1574_s18] sm:$0xff] (!%p811_p4) }
  0x72   : > { %841 = vmatpush3.bf16.msra.mxu0 %v453_v26  ;;  %v483_v46 = vcvt.s32.f32 %v481_v41  ;;  %v490_v48 = vand.u32 15, %v488_v43  ;;  %v809_v53 = vshrl.u32 %v1403_v4, 28  ;;  %v1158_v4 = vmov (!%p811_p4), 0  }
  0x73   : > { %842 = vmatprep.subr.bf16.mxu0 %v1156_v5  ;;  %v477_v45 = vpack.c.bf16 %v476_v40, %v475_v38  ;;  %v484_v47 = vcvt.s32.f32 %v482_v42  ;;  %v491_v51 = vcvt.s32.f32 %v489_v44  ;;  %v499_v55 = vcvt.s32.f32 %v808_v49  ;;  %982 = vset.pattern.permute.xlu0 (!%p811_p4), %v1158_v4 }
  0x74   : > { %v492_v52 = vcvt.s32.f32 %v490_v48  ;;  %v500_v56 = vcvt.s32.f32 %v809_v53  ;;  %586 = vperm.xlu0 (!%p811_p4), %982, %v581_v3  }
  0x75   : > { %v485_v50 = vpack.c.bf16 %v484_v47, %v483_v46 }
  0x76   : > { %843 = vmatpush3.bf16.msra.mxu0 %v461_v33  ;;  %v493_v54 = vpack.c.bf16 %v492_v52, %v491_v51  ;;  %v501_v57 = vpack.c.bf16 %v500_v56, %v499_v55 }
  0x77   : > { %844 = vmatprep.subr.bf16.mxu0 %v1156_v5 }
  0x7a   : > { %845 = vmatpush3.bf16.msra.mxu0 %v469_v37 }
  0x7b   : > { %846 = vmatprep.subr.bf16.mxu0 %v1156_v5 }
  0x7e   : > { %847 = vmatpush3.bf16.msra.mxu0 %v477_v45 }
  0x7f   : > { %848 = vmatprep.subr.bf16.mxu0 %v1156_v5 }
  0x82   : > { %849 = vmatpush3.bf16.msra.mxu0 %v485_v50 }
  0x83   : > { %850 = vmatprep.subr.bf16.mxu0 %v1156_v5 }
  0x86   : > { %851 = vmatpush3.bf16.msra.mxu0 %v493_v54 }
  0x87   : > { %852 = vmatprep.subr.bf16.mxu0 %v1156_v5  ;;  %v582_v5 = vld [vmem:[%s1574_s18 + $0x8] sm:$0xff] (!%p811_p4) }
  0x88   : > { %591 = vperm.xlu0 (!%p811_p4), %982, %v582_v5  }
  0x8a   : > { %853 = vmatpush3.bf16.msra.mxu0 %v501_v57 }
  0x8d   : > { %855 = vmatmul.mubr.bf16.vlgmr.msra.gmra.mrb[0].mxu0 %v981_v58 }
  0xf3   : > { %v587_v9 = vpop.permute.xlu0 (!%p811_p4), %586 }
  0xf4   : > { %v600_v12 = vmul.f32 (!%p811_p4), %v813_v6, %v587_v9 }
 0x107   : > { %v592_v14 = vpop.permute.xlu0 (!%p811_p4), %591 }
 0x108   : > { %v601_v16 = vmul.f32 (!%p811_p4), %v813_v6, %v592_v14 }
 0x15f   : > { %569 = sbr.rel (%p811_p4) target bundleno = 374 (0x176), region = 97 }
 0x160   : > { %v555_v60 = vpop.f32.mrb[0].mxu0 }
 0x161   : > { %v562_v62 = vadd.f32 %v555_v60, %v503_v59  ;;  %v856_v63 = vpop.f32.mrb[1].mxu0 }
 0x162   : > { %v558_v0 = vpop.f32.mrb[2].mxu0 }
 0x163   : > { %564 = vst [vmem:[#allocation2] sm:$0xff] %v562_v62  ;;  %v563_v1 = vadd.f32 %v558_v0, %v504_v61  ;;  %v857_v2 = vpop.f32.mrb[3].mxu0 }
 0x165   : > { %565 = vst [vmem:[#allocation2 + $0x8] sm:$0xff] %v563_v1 }
 0x16a   : > { %v571_v8 = vld [vmem:[#allocation2] sm:$0xff] }
 0x16b   : > { %v579_v11 = vmul.f32 %v812_v7, %v571_v8 }
 0x16c   : > { %v572_v10 = vld [vmem:[#allocation2 + $0x8] sm:$0xff] }
 0x16d   : > { %v580_v13 = vmul.f32 %v812_v7, %v572_v10  ;;  %v602_v15 = vsub.f32 %v579_v11, %v600_v12 }
 0x16f   : > { %v603_v18 = vsub.f32 %v580_v13, %v601_v16  ;;  %v611_v19 = vadd.f32 %v814_v17, %v602_v15 }
 0x171   : > { %v612_v20 = vadd.f32 %v814_v17, %v603_v18 }
 0x173   : > { %v827_v21 = vpack.c.bf16 %v612_v20, %v611_v19 }
 0x175   : > { %828 = vst [vmem:[%s413_s23] sm:$0xff] %v827_v21  }
 0x176 PF: > { %s818_s2 = sshll.u32 %s1137_s30, 6  ;;  %s1575_s20 = sld [smem:[#allocation21_spill]] }
 0x177   : > { %s639_s12 = sshll.u32 %s413_s23, 4  ;;  %s1468_s14 = scalar_lea.sflag [#allocation7], %s411_s11  ;;  %s1464_s12 = int_to_ptr.vmem [resolvable:$true] %s639_s12 }
 0x178   : > { %s1011_s17 = scalar_lea.vmem %s1464_s12, 128  ;;  %p1576_p1 = scmp.ne.s32.totalorder %s1571_s24, 0 }
 0x179   : > { %p1012_p5 = scmp.ne.s32.totalorder %s1464_s12, %s1011_s17  ;;  %s1159_s30 = smov [#allocation8]  }
 0x17a   : > { %s1015_s16 = sshll.u32 %s1159_s30, 4  ;;  %s1016_s16 = int_to_ptr.vmem [resolvable:$false] %s1015_s16 }
 0x17b   : > { %p1013_p2 = pnand %p1012_p5, %p1576_p1  ;;  %s1017_s10 = scalar_lea.vmem %s1016_s16, 256 }
 0x17c   : > { %s1460_s21 = scalar_lea.hbm %s1575_s20, %s818_s2  ;;  %p1018_p3 = scmp.lt.s32.totalorder %s1464_s12, %s1016_s16 }
 0x17d   : > { %p1014_p6 = pneg %p1013_p2  ;;  %p1019_p8 = scmp.lt.s32.totalorder %s1017_s10, %s1011_s17 }
 0x17f   : > { %p1020_p10 = por %p1019_p8, %p1018_p3 }
 0x181   : > { %p1021_p11 = pnand %p1020_p10, %p1014_p6 }
 0x183   : > { %1024 = shalt.err (!%p1021_p11)
}
 0x184   : > { %s1025_s11 = scalar_lea.hbm %s1460_s21, 128  ;;  %s1029_s29 = scalar_lea.hbm %s1575_s20, 256 }
 0x185   : > { %p1026_p9 = scmp.ne.s32.totalorder %s1460_s21, %s1025_s11  ;;  %p1030_p7 = scmp.lt.u32.totalorder %s1460_s21, %s1575_s20 }
 0x186   : > { %p1031_p12 = scmp.lt.u32.totalorder %s1029_s29, %s1025_s11  ;;  %p1033_p5 = scmp.lt.u32.totalorder %s1025_s11, %s1460_s21 }
 0x187   : > { %p1027_p13 = pnand %p1026_p9, %p1576_p1 }
 0x188   : > { %p1032_p4 = por %p1031_p12, %p1030_p7 }
 0x189   : > { %p1028_p0 = pneg %p1027_p13 }
 0x18a   : > { %p1034_p2 = por %p1033_p5, %p1032_p4 }
 0x18c   : > { %p1035_p6 = pnand %p1034_p2, %p1028_p0 }
 0x18e   : > { %1038 = shalt.err (!%p1035_p6)
}
 0x18f   : > { %s1160_s28 = smov 64   ;;  %s1161_s2 = smov 128  }
 0x190   : > { %s1162_s15 = smov 4  }
 0x191   : > { %860 = dma.vmem_to_hbm [thread:$0]  (%p1576_p1), %s1464_s12, 128, %s1460_s21, %s1468_s14, %s1160_s28, %s1161_s2, %s1162_s15  }
 0x192 PF: > { %s1577_s19 = sld [smem:[#allocation11_spill]]  ;;  %s1578_s17 = sld [smem:[#allocation19_spill]] }
 0x193   : > { %p866_p3 = scmp.ge.s32.totalorder %s1149_s9, 2 }
 0x198   : > { %s654_s30 = sand.u32 1, %s1577_s19   ;;  %p1579_p8 = scmp.ne.s32.totalorder %s1578_s17, 0 }
 0x199   : > { %s655_s16 = scalar_lea.sflag [#allocation7], %s654_s30 }
 0x19a   : > { %p863_p10 = pnand %p866_p3, %p1579_p8 }
 0x19c   : > { %1096 = dma.done.wait (!%p863_p10), %s655_s16, 128  }
 0x19d   : > { %1098 = vsyncadd (!%p863_p10), %s655_s16, 4294967168  ;;  %s22_s9 = sadd.s32 1, %s1149_s9   ;;  %s1581_s24 = sld [smem:[#allocation12_spill]] }
 0x19e   : > { %p1497_p11 = scmp.ge.s32.totalorder %s22_s9, 6   ;;  %s1582_s23 = sld [smem:[#allocation18_spill]] }
 0x19f   : > { %s1583_s12 = sld [smem:[#allocation17_spill]]  ;;  %s1584_s27 = sld [smem:[#allocation13_spill]] }
 0x1a0   : > { %s1585_s28 = sld [smem:[#allocation16_spill]]  ;;  %s1586_s14 = sld [smem:[#allocation14_spill]] }
 0x1a1   : > { %s1587_s11 = sld [smem:[#allocation15_spill]]  ;;  %s1588_s21 = smov %s1105_s22 }
 0x1a2   : > { %s1593_s29 = smov %s1141_s7  ;;  %s1594_s30 = smov %s1145_s8 }
 0x1a3   : > { %s1589_s22 = smov %s1581_s24  ;;  %s1590_s24 = smov %s1117_s25 }
 0x1a4   : > { %s1591_s25 = smov %s1121_s26  ;;  %21 = sbr.rel (!%p1497_p11) target bundleno = 13 (0xd), region = 158 }
 0x1a5   : > { %s1592_s26 = smov %s1583_s12 }
 0x1a6   : > { %s1595_s7 = smov %s1586_s14 }
 0x1a7   : > { %s1596_s8 = smov %s1587_s11 }
 0x1ab   :  { %660 = vsyncpa [#allocation6], 1 }
 0x1ac   :  { %662 = vsyncpa [#allocation6 + $0x1], 1 }
 0x1ad   :  { %663 = vsyncpa [#allocation7], 1 }
 0x1ae   :  { %665 = vsyncpa [#allocation7 + $0x1], 1 }

</bundles_post_ra>
